<compile_context>
chip_gen: v6e
topology: v6e:2x2x1
jax: 0.10.0
libtpu: 0.0.40
codegen_flags: <defaults>
</compile_context>

<pallas_src>
import jax
import jax.numpy as jnp
from jax.experimental import pallas as pl
from jax.experimental.pallas import tpu as pltpu


def mvn_pdf_kernel(params_ref, x_ref, o_ref):
    # params_ref: (5,) SMEM  -- [mean0, mean1, -0.5/diag0, -0.5/diag1, log_norm]
    # x_ref:      (2, TL) VMEM -- row 0 = feature 0, row 1 = feature 1 (batch on lanes)
    # o_ref:      (1, TL) VMEM -- density exp(log_prob), lane-dense
    m0 = params_ref[0]
    m1 = params_ref[1]
    c0 = params_ref[2]          # -0.5 / diag0  (scale folded in)
    c1 = params_ref[3]
    log_norm = params_ref[4]    # -0.5 * (2*log(2*pi) + sum(log(diag)))

    d0 = x_ref[0:1, :] - m0     # (1, TL) full-width VPU ops
    d1 = x_ref[1:2, :] - m1
    # log_prob = log_norm + c0*d0^2 + c1*d1^2 ; density = exp(log_prob) on EUP
    o_ref[...] = jnp.exp(log_norm + d0 * d0 * c0 + d1 * d1 * c1)


def mvn_density(x, mean, diag, *, block_lanes=4096):
    """exp(MultivariateNormal(mean, diag_embed(diag)).log_prob(x[..., :2]))."""
    x = x.astype(jnp.float32)
    batch_shape = x.shape[:-1]
    x2 = x.reshape(-1, x.shape[-1])[:, :2]          # pre-slice: only 2 features kept
    N = x2.shape[0]

    # Hoisted parameter math (O(1), outside the grid loop); -0.5 folded in.
    mean_f = mean.astype(jnp.float32).reshape(2)
    diag_f = diag.astype(jnp.float32).reshape(2)
    log_norm = -0.5 * (2.0 * jnp.log(2.0 * jnp.pi) + jnp.sum(jnp.log(diag_f)))
    params = jnp.concatenate([mean_f, -0.5 / diag_f, log_norm.reshape(1)]
                             ).astype(jnp.float32)  # (5,) -> SMEM

    # Lane tile: multiple of 128 (lane width), capped by block_lanes.
    tl = min(block_lanes, max(128, ((N + 127) // 128) * 128))
    tl = ((tl + 127) // 128) * 128
    n_pad = pl.cdiv(N, tl) * tl

    # Lane-dense input: batch on lanes. Padded columns are zeros -> finite
    # densities, sliced off below.
    xt = jnp.zeros((2, n_pad), jnp.float32).at[:, :N].set(x2.T)

    out = pl.pallas_call(
        mvn_pdf_kernel,
        out_shape=jax.ShapeDtypeStruct((1, n_pad), jnp.float32),
        grid=(n_pad // tl,),
        in_specs=[
            pl.BlockSpec(memory_space=pltpu.MemorySpace.SMEM),   # params (5,)
            pl.BlockSpec((2, tl), lambda i: (0, i)),             # lane-dense x
        ],
        out_specs=pl.BlockSpec((1, tl), lambda i: (0, i)),       # lane-dense out
        compiler_params=pltpu.CompilerParams(
            dimension_semantics=("parallel",)),
        cost_estimate=pl.CostEstimate(
            flops=8 * n_pad, transcendentals=n_pad, bytes_accessed=12 * n_pad),
    )(params, xt)
    return out[0, :N].reshape(batch_shape)


def mvn_density_ref(x, mean, diag):
    """Pure-JAX reference for correctness check."""
    x2 = x[..., :2].astype(jnp.float32)
    diff = x2 - mean
    quad = jnp.sum(diff * diff / diag, axis=-1)
    logdet = jnp.sum(jnp.log(diag))
    log_norm = -0.5 * (2.0 * jnp.log(2.0 * jnp.pi) + logdet)
    return jnp.exp(-0.5 * quad + log_norm)


if __name__ == "__main__":
    # Deterministic parameters matching the module's __init__
    mean = jnp.zeros((2,), dtype=jnp.float32)          # nn.Parameter(torch.zeros(2))
    diag = jnp.array([1.0, 0.5], dtype=jnp.float32)    # nn.Parameter(torch.Tensor([1.0, 0.5]))

    key = jax.random.PRNGKey(0)
    k1, k2 = jax.random.split(key)

    # Case 1: shape implied by the module's test harness (B=32, forward uses x[..., :2])
    x_small = jax.random.normal(k1, (32, 4), dtype=jnp.float32)
    out_small = jax.block_until_ready(mvn_density(x_small, mean, diag))
    ref_small = mvn_density_ref(x_small, mean, diag)
    if not jnp.allclose(out_small, ref_small, rtol=1e-5, atol=1e-6):
        raise AssertionError("Pallas kernel output does not match reference (small case)")

    # Case 2: exercises multi-tile grid, lane padding, and the wide-feature pre-slice path.
    x_big = jax.random.normal(k2, (5000, 256), dtype=jnp.float32)
    out_big = jax.block_until_ready(mvn_density(x_big, mean, diag, block_lanes=1024))
    ref_big = mvn_density_ref(x_big, mean, diag)
    if not jnp.allclose(out_big, ref_big, rtol=1e-5, atol=1e-6):
        raise AssertionError("Pallas kernel output does not match reference (tiled case)")

    print("KERNEL_OK")
</pallas_src>

<mosaic_0001>
module attributes {stable_mosaic.version = 11 : i64} {
  func.func @mvn_pdf_kernel(%arg0: i32, %arg1: memref<5xf32, #tpu.memory_space<smem>>, %arg2: memref<2x128xf32, #tpu.memory_space<vmem>>, %arg3: memref<1x128xf32, #tpu.memory_space<vmem>>) attributes {dimension_semantics = [#tpu.dimension_semantics<parallel>], iteration_bounds = array<i64: 1>, scalar_prefetch = 0 : i64, scratch_operands = 0 : i64, tpu.core_type = #tpu.core_type<tc>, window_params = [{transform_indices = @transform_0, window_bounds = array<i64: 5>}, {transform_indices = @transform_1, window_bounds = array<i64: 2, 128>}, {transform_indices = @transform_2, window_bounds = array<i64: 1, 128>}]} {
    %c0 = arith.constant 0 : index
    %0 = memref.load %arg1[%c0] : memref<5xf32, #tpu.memory_space<smem>>
    %c1 = arith.constant 1 : index
    %1 = memref.load %arg1[%c1] : memref<5xf32, #tpu.memory_space<smem>>
    %c2 = arith.constant 2 : index
    %2 = memref.load %arg1[%c2] : memref<5xf32, #tpu.memory_space<smem>>
    %c3 = arith.constant 3 : index
    %3 = memref.load %arg1[%c3] : memref<5xf32, #tpu.memory_space<smem>>
    %c4 = arith.constant 4 : index
    %4 = memref.load %arg1[%c4] : memref<5xf32, #tpu.memory_space<smem>>
    %c0_0 = arith.constant 0 : index
    %c0_1 = arith.constant 0 : index
    %5 = vector.load %arg2[%c0_0, %c0_1] : memref<2x128xf32, #tpu.memory_space<vmem>>, vector<1x128xf32>
    %6 = vector.broadcast %0 : f32 to vector<1x128xf32>
    %7 = arith.subf %5, %6 : vector<1x128xf32>
    %c1_2 = arith.constant 1 : index
    %c0_3 = arith.constant 0 : index
    %8 = vector.load %arg2[%c1_2, %c0_3] : memref<2x128xf32, #tpu.memory_space<vmem>>, vector<1x128xf32>
    %9 = vector.broadcast %1 : f32 to vector<1x128xf32>
    %10 = arith.subf %8, %9 : vector<1x128xf32>
    %11 = arith.mulf %7, %7 : vector<1x128xf32>
    %12 = vector.broadcast %2 : f32 to vector<1x128xf32>
    %13 = arith.mulf %11, %12 : vector<1x128xf32>
    %14 = vector.broadcast %4 : f32 to vector<1x128xf32>
    %15 = arith.addf %14, %13 : vector<1x128xf32>
    %16 = arith.mulf %10, %10 : vector<1x128xf32>
    %17 = vector.broadcast %3 : f32 to vector<1x128xf32>
    %18 = arith.mulf %16, %17 : vector<1x128xf32>
    %19 = arith.addf %15, %18 : vector<1x128xf32>
    %20 = math.exp %19 : vector<1x128xf32>
    %c0_4 = arith.constant 0 : index
    %c0_5 = arith.constant 0 : index
    %21 = vector.load %arg3[%c0_4, %c0_5] : memref<1x128xf32, #tpu.memory_space<vmem>>, vector<1x128xf32>
    tpu.vector_store %arg3[%c0_4, %c0_5], %20 {strides = array<i32>} : memref<1x128xf32, #tpu.memory_space<vmem>>, vector<1x128xf32>,
    return
  }
  func.func @transform_0(%arg0: i32) -> i32 {
    %c0_i32 = arith.constant 0 : i32
    %c0_i32_0 = arith.constant 0 : i32
    return %c0_i32 : i32
  }
  func.func @transform_1(%arg0: i32) -> (i32, i32) {
    %c0_i32 = arith.constant 0 : i32
    %c0_i32_0 = arith.constant 0 : i32
    return %c0_i32, %arg0 : i32, i32
  }
  func.func @transform_2(%arg0: i32) -> (i32, i32) {
    %c0_i32 = arith.constant 0 : i32
    %c0_i32_0 = arith.constant 0 : i32
    return %c0_i32, %arg0 : i32, i32
  }
}

</mosaic_0001>

<bundles_post_ra>
// kernel: tpu_custom_call.1
= control target key start
LH: loop header
LB: loop body
LE: loop exit
PB: predicated region body
PF: predicated region fallthrough
CT: control target
= control target key end

     0   :  { %7 = vsyncpa [#allocation5], 0  ;;  %s164_s0 = inlined_call_operand.hbm [shape: f32[5], index: 0, kind: input, shape index: {}]   ;;  %s165_s1 = inlined_call_operand.hbm [shape: f32[2,128], index: 1, kind: input, shape index: {}]   ;;  %s166_s2 = inlined_call_operand.hbm [shape: f32[1,128], index: 2, kind: output, shape index: {}]  }
   0x1   :  { %8 = vsyncpa [#allocation3], 0 }
   0x2   :  { %9 = vsyncpa [#allocation4], 0  ;;  %s137_s9 = smov [#allocation2]   ;;  %s138_s12 = smov [#allocation6]  }
   0x3   :  { %17 = dma.hbm_to_smem %s164_s0, 16, %s137_s9, [#allocation5]  }
   0x4   :  { %s24_s13 = sshll.u32 %s138_s12, 4  ;;  %s25_s13 = int_to_ptr.vmem [resolvable:$true] %s24_s13 }
   0x5   :  { %s99_s14 = scalar_lea.vmem %s25_s13, 32  ;;  %p104_p1 = scmp.lt.s32.totalorder %s25_s13, %s25_s13 }
   0x6   :  { %p100_p0 = scmp.ne.s32.totalorder %s25_s13, %s99_s14  ;;  %p105_p2 = scmp.lt.s32.totalorder %s99_s14, %s99_s14 }
   0x8   :  { %p106_p3 = por %p105_p2, %p104_p1 }
   0xa   :  { %p107_p4 = pnand %p106_p3, %p100_p0 }
   0xc   :  { %110 = shalt.err (!%p107_p4)
}
   0xd   :  { %27 = dma.hbm_to_vmem [thread:$0]  %s165_s1, 32, %s25_s13, [#allocation3]  }
   0xe   :  { %131 = dma.done.wait [#allocation5], 16  }
   0xf   :  { %132 = vsyncadd [#allocation5], 4294967280 }
  0x10   :  { %133 = dma.done.wait [#allocation3], 32  }
  0x11   :  { %134 = vsyncadd [#allocation3], 4294967264 }
  0x12   :  { %34 = sfence }
  0x13   :  { %s35_s0 = sld [smem:[#allocation2]]  ;;  %v40_v0 = vld [vmem:[#allocation6] sm:$0x1]  ;;  %v43_v1 = vld [vmem:[#allocation6 + $0x1] sm:$0x1]  ;;  %s139_s1 = smov [#allocation7]  }
  0x14   :  { %s74_s17 = sld [smem:[#allocation2 + $0x1]]  ;;  %s64_s21 = sshll.u32 %s139_s1, 4  ;;  %s65_s21 = int_to_ptr.vmem [resolvable:$true] %s64_s21 }
  0x15   :  { %s75_s18 = sld [smem:[#allocation2 + $0x2]]  ;;  %s111_s22 = scalar_lea.vmem %s65_s21, 16 }
  0x16   :  { %s76_s19 = sld [smem:[#allocation2 + $0x3]]  ;;  %p112_p5 = scmp.ne.s32.totalorder %s65_s21, %s111_s22 }
  0x17   :  { %s77_s20 = sld [smem:[#allocation2 + $0x4]]  ;;  %s115_s23 = scalar_lea.vmem %s65_s21, 32 }
  0x18   :  { %p116_p6 = scmp.lt.s32.totalorder %s65_s21, %s65_s21  ;;  %p117_p7 = scmp.lt.s32.totalorder %s115_s23, %s111_s22 }
  0x19   :  { %v41_v2 = vstv %s35_s0 }
  0x1a   :  { %v42_v3 = vsub.f32 %v40_v0, %v41_v2  ;;  %v44_v4 = vstv %s74_s17  ;;  %p118_p8 = por %p117_p7, %p116_p6 }
  0x1b   :  { %v45_v5 = vsub.f32 %v43_v1, %v44_v4  ;;  %v47_v6 = vstv %s75_s18 }
  0x1c   :  { %v46_v7 = vmul.f32 %v42_v3, %v42_v3  ;;  %v52_v8 = vstv %s76_s19  ;;  %p119_p9 = pnand %p118_p8, %p112_p5 }
  0x1d   :  { %v49_v9 = vstv %s77_s20  ;;  %v51_v10 = vmul.f32 %v45_v5, %v45_v5 }
  0x1e   :  { %v48_v11 = vmul.f32 %v47_v6, %v46_v7 }
  0x1f   :  { %v53_v12 = vmul.f32 %v52_v8, %v51_v10 }
  0x20   :  { %v50_v13 = vadd.f32 %v49_v9, %v48_v11 }
  0x22   :  { %v54_v14 = vadd.f32 %v53_v12, %v50_v13 }
  0x24   :  { %v55_v15 = vmul.f32 1.442695, %v54_v14 }
  0x26   :  { %81 = vpow2.f32 %v55_v15 }
  0x33   :  { %v82_v16 = vpop.eup %81 }
  0x34   :  { %57 = vst [vmem:[#allocation7] sm:$0x1] %v82_v16 }
  0x35   :  { %122 = shalt.err (!%p119_p9)
}
  0x36   :  { %67 = dma.vmem_to_hbm [thread:$0]  %s65_s21, 16, %s166_s2, [#allocation4]  }
  0x37   :  { %135 = dma.done.wait [#allocation4], 16  }
  0x38   :  { %136 = vsyncadd [#allocation4], 4294967280 }
  0x39   :  { %71 = vsyncpa [#allocation3], 1 }
  0x3a   :  { %72 = vsyncpa [#allocation4], 1 }
  0x3b   :  { %73 = vsyncpa [#allocation5], 1 }

</bundles_post_ra>
